<compile_context>
chip_gen: v6e
topology: v6e:2x2x1
jax: 0.10.0
libtpu: 0.0.40
codegen_flags: <defaults>
</compile_context>

<pallas_src>
import functools

import jax
import jax.numpy as jnp
from jax.experimental import pallas as pl
from jax.experimental.pallas import tpu as pltpu

_LANE = 128
_WIDTH_CANDIDATES = (4096, 2048, 1024, 512, 256, 128)
_TILE_BYTES = 2 * 1024 * 1024  # ~2 MiB input tile; 4 bufs x 2 MiB fits v5e scoped VMEM


def _sublane_multiple(itemsize: int) -> int:
    # packed sublane counts: f32 -> 8, bf16 -> 16, 8-bit -> 32
    return {4: 8, 2: 16, 1: 32}.get(itemsize, 8)


def _make_slab(x_flat: jax.Array, pad_value: float):
    """Lane-dense (rows, W) view of the flat input.

    Prefers a width that divides n exactly (free reshape, no extra HBM pass).
    Falls back to padding only when nothing in _WIDTH_CANDIDATES divides n.
    """
    n = x_flat.shape[0]
    for w in _WIDTH_CANDIDATES:
        if n % w == 0:
            return x_flat.reshape(n // w, w), n, False
    # TODO(synk): fallback pad costs one extra HBM pass; only hit when n is not
    # divisible by 128 (rare for conv discriminator outputs).
    w = 1024
    n_pad = pl.cdiv(n, w) * w
    x_pad = jnp.pad(x_flat, (0, n_pad - n), constant_values=pad_value)
    return x_pad.reshape(n_pad // w, w), n, True


def _row_block(rows: int, width: int, itemsize: int) -> int:
    sub = _sublane_multiple(itemsize)
    rb = max(sub, _TILE_BYTES // (width * 4))
    rb = min(rb, rows)
    rb_rounded = (rb // sub) * sub
    return rb_rounded if rb_rounded > 0 else rows


def _sq_sum_kernel(tgt_ref, x_ref, o_ref, acc_ref, *, inner, n_valid, need_mask):
    """Per-chunk partial sum of (x - target)^2, accumulated in a vreg-shaped f32 acc."""
    i = pl.program_id(1)

    @pl.when(i == 0)
    def _():
        acc_ref[...] = jnp.zeros_like(acc_ref)

    rb, w = x_ref.shape
    acc_rows = acc_ref.shape[0]
    t = tgt_ref[0]

    d = x_ref[...].astype(jnp.float32) - t
    if need_mask:
        # mask ragged / duplicated-tail blocks and any pad elements to zero
        block_idx = pl.program_id(0) * inner + i
        row_ids = block_idx * rb + jax.lax.broadcasted_iota(jnp.int32, (rb, w), 0)
        col_ids = jax.lax.broadcasted_iota(jnp.int32, (rb, w), 1)
        d = jnp.where(row_ids * w + col_ids < n_valid, d, 0.0)
    sq = d * d

    # fold sublane-groups onto the (acc_rows, w) accumulator -- pure VPU adds
    part = sq[0:acc_rows, :]
    for g in range(1, rb // acc_rows):
        part = part + sq[g * acc_rows:(g + 1) * acc_rows, :]
    acc_ref[...] += part

    @pl.when(i == pl.num_programs(1) - 1)
    def _():
        # fold the lane dimension down to one 128-wide vreg column; the final
        # cross-lane reduce of (chunks, acc_rows, 128) happens in the wrapper.
        acc = acc_ref[...]
        lanes = acc[:, 0:_LANE]
        for g in range(1, w // _LANE):
            lanes = lanes + acc[:, g * _LANE:(g + 1) * _LANE]
        o_ref[0] = lanes


def _sq_elem_kernel(tgt_ref, x_ref, o_ref):
    t = tgt_ref[0]
    d = x_ref[...].astype(jnp.float32) - t
    o_ref[...] = (d * d).astype(o_ref.dtype)


def mse_loss(x: jax.Array, target, reduction: str = "mean") -> jax.Array:
    if reduction not in ("mean", "sum", "none"):
        raise ValueError("Invalid reduction.")

    orig_shape = x.shape
    orig_dtype = x.dtype
    itemsize = jnp.dtype(orig_dtype).itemsize
    x_flat = x.reshape(-1)

    tgt = jnp.full((1,), target, dtype=jnp.float32)  # SMEM scalar: no recompile per target
    smem_spec = pl.BlockSpec(memory_space=pltpu.MemorySpace.SMEM)

    if reduction == "none":
        slab, n, padded = _make_slab(x_flat, 0.0)
        rows, w = slab.shape
        rb = _row_block(rows, w, itemsize)
        grid = (pl.cdiv(rows, rb),)
        out = pl.pallas_call(
            _sq_elem_kernel,
            out_shape=jax.ShapeDtypeStruct((rows, w), orig_dtype),
            grid_spec=pltpu.PrefetchScalarGridSpec(
                num_scalar_prefetch=0,
                grid=grid,
                in_specs=[smem_spec,
                          pl.BlockSpec((rb, w), lambda i: (i, 0))],
                out_specs=pl.BlockSpec((rb, w), lambda i: (i, 0)),
            ),
            compiler_params=pltpu.CompilerParams(
                dimension_semantics=("parallel",)),
        )(tgt, slab)
        if padded:
            return out.reshape(-1)[:n].reshape(orig_shape)
        return out.reshape(orig_shape)

    # ---- mean / sum ----
    slab, n_valid, padded = _make_slab(x_flat, 0.0)
    rows, w = slab.shape
    rb = _row_block(rows, w, itemsize)
    nblk = pl.cdiv(rows, rb)
    n_chunks = 2 if nblk >= 2 else 1          # lets v7x split across both TCs
    inner = pl.cdiv(nblk, n_chunks)
    acc_rows = 8 if rb % 8 == 0 else rb
    need_mask = padded or (n_chunks * inner * rb != rows)
    need_clamp = (n_chunks * inner > nblk)    # extra tail blocks: clamp fetch, mask to 0

    if need_clamp:
        in_idx = lambda c, i: (jnp.minimum(c * inner + i, nblk - 1), 0)
    else:
        in_idx = lambda c, i: (c * inner + i, 0)

    partials = pl.pallas_call(
        functools.partial(_sq_sum_kernel, inner=inner, n_valid=n_valid,
                          need_mask=need_mask),
        out_shape=jax.ShapeDtypeStruct((n_chunks, acc_rows, _LANE), jnp.float32),
        grid_spec=pltpu.PrefetchScalarGridSpec(
            num_scalar_prefetch=0,
            grid=(n_chunks, inner),
            in_specs=[smem_spec,
                      pl.BlockSpec((rb, w), in_idx)],
            out_specs=pl.BlockSpec((1, acc_rows, _LANE), lambda c, i: (c, 0, 0)),
            scratch_shapes=[pltpu.VMEM((acc_rows, w), jnp.float32)],
        ),
        compiler_params=pltpu.CompilerParams(
            dimension_semantics=("parallel", "arbitrary")),
    )(tgt, slab)

    total = jnp.sum(partials, dtype=jnp.float32)
    if reduction == "mean":
        total = total / jnp.float32(n_valid)
    return total.astype(orig_dtype)


if __name__ == "__main__":
    key = jax.random.PRNGKey(0)
    # small NCHW-like input, consistent with usage on discriminator outputs
    x = jax.random.normal(key, (2, 4, 16, 16), dtype=jnp.float32)

    target = 1.0  # LSGAN "real" target

    out_mean = jax.block_until_ready(mse_loss(x, target, reduction="mean"))
    out_sum = jax.block_until_ready(mse_loss(x, target, reduction="sum"))
    out_none = jax.block_until_ready(mse_loss(x, target, reduction="none"))

    # reference check against plain JAX
    ref = (x - target) ** 2
    assert jnp.allclose(out_mean, ref.mean(), rtol=1e-5, atol=1e-5)
    assert jnp.allclose(out_sum, ref.sum(), rtol=1e-5, atol=1e-4)
    assert out_none.shape == x.shape
    assert jnp.allclose(out_none, ref, rtol=1e-5, atol=1e-5)

    print("KERNEL_OK")
</pallas_src>

<mosaic_0001>
module attributes {stable_mosaic.version = 11 : i64} {
  func.func @_sq_sum_kernel(%arg0: i32, %arg1: i32, %arg2: memref<1xf32, #tpu.memory_space<smem>>, %arg3: memref<1x2048xf32, #tpu.memory_space<vmem>>, %arg4: memref<1x1x128xf32, #tpu.memory_space<vmem>>, %arg5: memref<1x2048xf32, #tpu.memory_space<vmem>>) attributes {dimension_semantics = [#tpu.dimension_semantics<parallel>, #tpu.dimension_semantics<arbitrary>], iteration_bounds = array<i64: 1, 1>, scalar_prefetch = 0 : i64, scratch_operands = 1 : i64, tpu.core_type = #tpu.core_type<tc>, window_params = [{transform_indices = @transform_0, window_bounds = array<i64: 1>}, {transform_indices = @transform_1, window_bounds = array<i64: 1, 2048>}, {transform_indices = @transform_2, window_bounds = array<i64: 1, 1, 128>}]} {
    %c0_i32 = arith.constant 0 : i32
    %0 = arith.cmpi eq, %arg1, %c0_i32 : i32
    %1 = arith.extui %0 : i1 to i32
    %c0_i32_0 = arith.constant 0 : i32
    %2 = arith.cmpi ne, %1, %c0_i32_0 : i32
    scf.if %2 {
      %cst = arith.constant 0.000000e+00 : f32
      %14 = vector.broadcast %cst : f32 to vector<1x2048xf32>
      %c0_9 = arith.constant 0 : index
      %c0_10 = arith.constant 0 : index
      %15 = vector.load %arg5[%c0_9, %c0_10] : memref<1x2048xf32, #tpu.memory_space<vmem>>, vector<1x2048xf32>
      tpu.vector_store %arg5[%c0_9, %c0_10], %14 {strides = array<i32>} : memref<1x2048xf32, #tpu.memory_space<vmem>>, vector<1x2048xf32>,
    } else {
    }
    %c0 = arith.constant 0 : index
    %3 = memref.load %arg2[%c0] : memref<1xf32, #tpu.memory_space<smem>>
    %c0_1 = arith.constant 0 : index
    %c0_2 = arith.constant 0 : index
    %4 = vector.load %arg3[%c0_1, %c0_2] : memref<1x2048xf32, #tpu.memory_space<vmem>>, vector<1x2048xf32>
    %5 = vector.broadcast %3 : f32 to vector<1x2048xf32>
    %6 = arith.subf %4, %5 : vector<1x2048xf32>
    %7 = arith.mulf %6, %6 : vector<1x2048xf32>
    %c0_3 = arith.constant 0 : index
    %c0_4 = arith.constant 0 : index
    %8 = vector.load %arg5[%c0_3, %c0_4] : memref<1x2048xf32, #tpu.memory_space<vmem>>, vector<1x2048xf32>
    %9 = arith.addf %8, %7 : vector<1x2048xf32>
    %c0_5 = arith.constant 0 : index
    %c0_6 = arith.constant 0 : index
    %10 = vector.load %arg5[%c0_5, %c0_6] : memref<1x2048xf32, #tpu.memory_space<vmem>>, vector<1x2048xf32>
    tpu.vector_store %arg5[%c0_5, %c0_6], %9 {strides = array<i32>} : memref<1x2048xf32, #tpu.memory_space<vmem>>, vector<1x2048xf32>,
    %c0_i32_7 = arith.constant 0 : i32
    %11 = arith.cmpi eq, %arg1, %c0_i32_7 : i32
    %12 = arith.extui %11 : i1 to i32
    %c0_i32_8 = arith.constant 0 : i32
    %13 = arith.cmpi ne, %12, %c0_i32_8 : i32
    scf.if %13 {
      %c0_9 = arith.constant 0 : index
      %c0_10 = arith.constant 0 : index
      %14 = vector.load %arg5[%c0_9, %c0_10] : memref<1x2048xf32, #tpu.memory_space<vmem>>, vector<1x2048xf32>
      %15 = vector.extract_strided_slice %14 {offsets = [0, 0], sizes = [1, 128], strides = [1, 1]} : vector<1x2048xf32> to vector<1x128xf32>
      %16 = vector.extract_strided_slice %14 {offsets = [0, 128], sizes = [1, 128], strides = [1, 1]} : vector<1x2048xf32> to vector<1x128xf32>
      %17 = arith.addf %15, %16 : vector<1x128xf32>
      %18 = vector.extract_strided_slice %14 {offsets = [0, 256], sizes = [1, 128], strides = [1, 1]} : vector<1x2048xf32> to vector<1x128xf32>
      %19 = arith.addf %17, %18 : vector<1x128xf32>
      %20 = vector.extract_strided_slice %14 {offsets = [0, 384], sizes = [1, 128], strides = [1, 1]} : vector<1x2048xf32> to vector<1x128xf32>
      %21 = arith.addf %19, %20 : vector<1x128xf32>
      %22 = vector.extract_strided_slice %14 {offsets = [0, 512], sizes = [1, 128], strides = [1, 1]} : vector<1x2048xf32> to vector<1x128xf32>
      %23 = arith.addf %21, %22 : vector<1x128xf32>
      %24 = vector.extract_strided_slice %14 {offsets = [0, 640], sizes = [1, 128], strides = [1, 1]} : vector<1x2048xf32> to vector<1x128xf32>
      %25 = arith.addf %23, %24 : vector<1x128xf32>
      %26 = vector.extract_strided_slice %14 {offsets = [0, 768], sizes = [1, 128], strides = [1, 1]} : vector<1x2048xf32> to vector<1x128xf32>
      %27 = arith.addf %25, %26 : vector<1x128xf32>
      %28 = vector.extract_strided_slice %14 {offsets = [0, 896], sizes = [1, 128], strides = [1, 1]} : vector<1x2048xf32> to vector<1x128xf32>
      %29 = arith.addf %27, %28 : vector<1x128xf32>
      %30 = vector.extract_strided_slice %14 {offsets = [0, 1024], sizes = [1, 128], strides = [1, 1]} : vector<1x2048xf32> to vector<1x128xf32>
      %31 = arith.addf %29, %30 : vector<1x128xf32>
      %32 = vector.extract_strided_slice %14 {offsets = [0, 1152], sizes = [1, 128], strides = [1, 1]} : vector<1x2048xf32> to vector<1x128xf32>
      %33 = arith.addf %31, %32 : vector<1x128xf32>
      %34 = vector.extract_strided_slice %14 {offsets = [0, 1280], sizes = [1, 128], strides = [1, 1]} : vector<1x2048xf32> to vector<1x128xf32>
      %35 = arith.addf %33, %34 : vector<1x128xf32>
      %36 = vector.extract_strided_slice %14 {offsets = [0, 1408], sizes = [1, 128], strides = [1, 1]} : vector<1x2048xf32> to vector<1x128xf32>
      %37 = arith.addf %35, %36 : vector<1x128xf32>
      %38 = vector.extract_strided_slice %14 {offsets = [0, 1536], sizes = [1, 128], strides = [1, 1]} : vector<1x2048xf32> to vector<1x128xf32>
      %39 = arith.addf %37, %38 : vector<1x128xf32>
      %40 = vector.extract_strided_slice %14 {offsets = [0, 1664], sizes = [1, 128], strides = [1, 1]} : vector<1x2048xf32> to vector<1x128xf32>
      %41 = arith.addf %39, %40 : vector<1x128xf32>
      %42 = vector.extract_strided_slice %14 {offsets = [0, 1792], sizes = [1, 128], strides = [1, 1]} : vector<1x2048xf32> to vector<1x128xf32>
      %43 = arith.addf %41, %42 : vector<1x128xf32>
      %44 = vector.extract_strided_slice %14 {offsets = [0, 1920], sizes = [1, 128], strides = [1, 1]} : vector<1x2048xf32> to vector<1x128xf32>
      %45 = arith.addf %43, %44 : vector<1x128xf32>
      %c0_11 = arith.constant 0 : index
      %c0_12 = arith.constant 0 : index
      %c0_13 = arith.constant 0 : index
      %46 = vector.load %arg4[%c0_11, %c0_12, %c0_13] : memref<1x1x128xf32, #tpu.memory_space<vmem>>, vector<1x1x128xf32>
      %47 = vector.shape_cast %46 : vector<1x1x128xf32> to vector<1x128xf32>
      %48 = vector.shape_cast %45 : vector<1x128xf32> to vector<1x1x128xf32>
      tpu.vector_store %arg4[%c0_11, %c0_12, %c0_13], %48 {strides = array<i32>} : memref<1x1x128xf32, #tpu.memory_space<vmem>>, vector<1x1x128xf32>,
    } else {
    }
    return
  }
  func.func @transform_0(%arg0: i32, %arg1: i32) -> i32 {
    %c0_i32 = arith.constant 0 : i32
    %c0_i32_0 = arith.constant 0 : i32
    return %c0_i32 : i32
  }
  func.func @transform_1(%arg0: i32, %arg1: i32) -> (i32, i32) {
    %c1_i32 = arith.constant 1 : i32
    %0 = arith.muli %arg0, %c1_i32 : i32
    %1 = arith.addi %0, %arg1 : i32
    %c0_i32 = arith.constant 0 : i32
    %c0_i32_0 = arith.constant 0 : i32
    return %1, %c0_i32 : i32, i32
  }
  func.func @transform_2(%arg0: i32, %arg1: i32) -> (i32, i32, i32) {
    %c0_i32 = arith.constant 0 : i32
    %c0_i32_0 = arith.constant 0 : i32
    %c0_i32_1 = arith.constant 0 : i32
    return %arg0, %c0_i32, %c0_i32_0 : i32, i32, i32
  }
}

</mosaic_0001>

<bundles_post_ra>
// kernel: tpu_custom_call.1
= control target key start
LH: loop header
LB: loop body
LE: loop exit
PB: predicated region body
PF: predicated region fallthrough
CT: control target
= control target key end

     0   :  { %8 = vsyncpa [#allocation5], 0  ;;  %s188_s0 = inlined_call_operand.<no memory space> [shape: f32[1], index: 0, kind: input, shape index: {}]   ;;  %s189_s1 = inlined_call_operand.hbm [shape: f32[1,2048], index: 1, kind: input, shape index: {}]   ;;  %s190_s2 = inlined_call_operand.hbm [shape: f32[1,1,128], index: 2, kind: output, shape index: {}]  }
   0x1   :  { %9 = vsyncpa [#allocation6], 0  ;;  %s162_s9 = smov [#allocation4]  }
   0x2   :  { %s22_s10 = sshll.u32 %s162_s9, 4  ;;  %s23_s10 = int_to_ptr.vmem [resolvable:$true] %s22_s10 }
   0x3   :  { %s126_s11 = scalar_lea.vmem %s23_s10, 256  ;;  %p131_p1 = scmp.lt.s32.totalorder %s23_s10, %s23_s10 }
   0x4   :  { %p127_p0 = scmp.ne.s32.totalorder %s23_s10, %s126_s11  ;;  %p132_p2 = scmp.lt.s32.totalorder %s126_s11, %s126_s11 }
   0x6   :  { %p133_p3 = por %p132_p2, %p131_p1 }
   0x8   :  { %p134_p4 = pnand %p133_p3, %p127_p0 }
   0xa   :  { %137 = shalt.err (!%p134_p4)
}
   0xb   :  { %25 = dma.hbm_to_vmem [thread:$0]  %s189_s1, 256, %s23_s10, [#allocation5]  }
   0xc   :  { %158 = dma.done.wait [#allocation5], 256  }
   0xd   :  { %159 = vsyncadd [#allocation5], 4294967040  ;;  %v39_v0 = vstv %s188_s0  ;;  %v37_v1 = vld [vmem:[#allocation4] sm:$0xff]  ;;  %v38_v8 = vld [vmem:[#allocation4 + $0x8] sm:$0xff]  ;;  %s163_s0 = smov [#allocation7]  }
   0xe   :  { %v40_v2 = vsub.f32 %v37_v1, %v39_v0  ;;  %v41_v11 = vsub.f32 %v38_v8, %v39_v0  ;;  %s107_s1 = sshll.u32 %s163_s0, 4  ;;  %s108_s1 = int_to_ptr.vmem [resolvable:$true] %s107_s1 }
   0xf   :  { %s138_s16 = scalar_lea.vmem %s108_s1, 16  ;;  %s142_s17 = scalar_lea.vmem %s108_s1, 32 }
  0x10   :  { %v42_v3 = vmul.f32 %v40_v2, %v40_v2  ;;  %v43_v16 = vmul.f32 %v41_v11, %v41_v11  ;;  %p139_p5 = scmp.ne.s32.totalorder %s108_s1, %s138_s16  ;;  %p143_p6 = scmp.lt.s32.totalorder %s108_s1, %s108_s1 }
  0x11   :  { %p144_p7 = scmp.lt.s32.totalorder %s142_s17, %s138_s16 }
  0x12   :  { %v56_v4 = vrot.slane %v42_v3, 1  ;;  %v59_v5 = vrot.slane %v42_v3, 2  ;;  %v62_v7 = vrot.slane %v42_v3, 3  ;;  %v65_v10 = vrot.slane %v42_v3, 4 }
  0x13   :  { %v68_v13 = vrot.slane %v42_v3, 5  ;;  %v71_v15 = vrot.slane %v42_v3, 6  ;;  %v74_v18 = vrot.slane %v42_v3, 7  ;;  %v79_v21 = vrot.slane %v43_v16, 1  ;;  %p145_p8 = por %p144_p7, %p143_p6 }
  0x14   :  { %v58_v6 = vadd.f32 %v56_v4, %v42_v3  ;;  %v82_v23 = vrot.slane %v43_v16, 2  ;;  %v85_v25 = vrot.slane %v43_v16, 3  ;;  %v88_v27 = vrot.slane %v43_v16, 4 }
  0x15   :  { %v91_v29 = vrot.slane %v43_v16, 5  ;;  %v94_v31 = vrot.slane %v43_v16, 6  ;;  %v97_v33 = vrot.slane %v43_v16, 7  ;;  %p146_p9 = pnand %p145_p8, %p139_p5 }
  0x16   :  { %v61_v9 = vadd.f32 %v59_v5, %v58_v6 }
  0x18   :  { %v64_v12 = vadd.f32 %v62_v7, %v61_v9 }
  0x1a   :  { %v67_v14 = vadd.f32 %v65_v10, %v64_v12 }
  0x1c   :  { %v70_v17 = vadd.f32 %v68_v13, %v67_v14 }
  0x1e   :  { %v73_v19 = vadd.f32 %v71_v15, %v70_v17 }
  0x20   :  { %v76_v20 = vadd.f32 %v74_v18, %v73_v19 }
  0x22   :  { %v77_v22 = vadd.f32 %v76_v20, %v43_v16 }
  0x24   :  { %v81_v24 = vadd.f32 %v79_v21, %v77_v22 }
  0x26   :  { %v84_v26 = vadd.f32 %v82_v23, %v81_v24 }
  0x28   :  { %v87_v28 = vadd.f32 %v85_v25, %v84_v26 }
  0x2a   :  { %v90_v30 = vadd.f32 %v88_v27, %v87_v28 }
  0x2c   :  { %v93_v32 = vadd.f32 %v91_v29, %v90_v30 }
  0x2e   :  { %v96_v34 = vadd.f32 %v94_v31, %v93_v32 }
  0x30   :  { %v99_v35 = vadd.f32 %v97_v33, %v96_v34 }
  0x32   :  { %100 = vst [vmem:[#allocation7] sm:$0x1] %v99_v35 }
  0x33   :  { %149 = shalt.err (!%p146_p9)
}
  0x34   :  { %110 = dma.vmem_to_hbm [thread:$0]  %s108_s1, 16, %s190_s2, [#allocation6]  }
  0x35   :  { %160 = dma.done.wait [#allocation6], 16  }
  0x36   :  { %161 = vsyncadd [#allocation6], 4294967280 }
  0x37   :  { %114 = vsyncpa [#allocation5], 1 }
  0x38   :  { %115 = vsyncpa [#allocation6], 1 }

</bundles_post_ra>
